<compile_context>
chip_gen: v6e
topology: v6e:2x2x1
jax: 0.10.0
libtpu: 0.0.40
codegen_flags: <defaults>
</compile_context>

<pallas_src>
import math
import functools

import jax
import jax.numpy as jnp
from jax.experimental import pallas as pl
from jax.experimental.pallas import tpu as pltpu


def _self_attention_kernel(x_ref, w_ref, b_ref, o_ref, *, H, Dout, mxu_dtype):
    """One grid step handles one block of batch elements.

    x_ref : (BB, S, Din)        VMEM
    w_ref : (Din, 2H + Dout)    VMEM   (fused [Wq*scale | Wk | Wv])
    b_ref : (1, 2H + Dout)      VMEM   (fused [bq*scale | bk | bv])
    o_ref : (BB, S, Dout)       VMEM
    """
    BB, S, Din = x_ref.shape

    # Single fused Q/K/V projection over the flattened (BB*S, Din) activations.
    x = x_ref[...].reshape(BB * S, Din).astype(mxu_dtype)
    w = w_ref[...].astype(mxu_dtype)
    qkv = jnp.dot(x, w, preferred_element_type=jnp.float32) + b_ref[...]
    qkv = qkv.reshape(BB, S, 2 * H + Dout)

    q = qkv[:, :, :H]            # already scaled by 1/sqrt(H) (folded into Wq/bq)
    k = qkv[:, :, H:2 * H]
    v = qkv[:, :, 2 * H:]

    # Scores: (BB, S, S) — batched dot_general contracting the feature dim
    # (no explicit k transpose / XLU work).
    s = jnp.einsum("bqh,bkh->bqk", q.astype(mxu_dtype), k.astype(mxu_dtype),
                   preferred_element_type=jnp.float32)

    # Numerically-stable softmax along the last axis (f32 on the VPU/EUP).
    m = jnp.max(s, axis=-1, keepdims=True)
    e = jnp.exp(s - m)
    denom = jnp.sum(e, axis=-1, keepdims=True)
    p = e * pl.reciprocal(denom, approx=True)

    # Attention-weighted values: (BB, S, Dout)
    out = jnp.einsum("bqk,bkd->bqd", p.astype(mxu_dtype), v.astype(mxu_dtype),
                     preferred_element_type=jnp.float32)
    o_ref[...] = out.astype(o_ref.dtype)


def self_attention_pallas(x, params, hidden_dim, *, batch_block=None,
                          mxu_dtype=jnp.float32):
    """x: (B, S, Din) f32.  params: dict of pre-transposed weights/biases.

    mxu_dtype=jnp.bfloat16 halves MXU-operand / weight bytes on v6e/v7x
    (accumulation and softmax stay f32)."""
    B, S, Din = x.shape
    H = params["wq"].shape[1]
    Dout = params["wv"].shape[1]

    # Fold the 1/sqrt(hidden_dim) attention scale into the query projection (exact, free),
    # and fuse the three projections into one lane-dense matmul.
    scale = 1.0 / math.sqrt(hidden_dim)
    w_fused = jnp.concatenate(
        [params["wq"] * scale, params["wk"], params["wv"]], axis=1)        # (Din, 2H+Dout)
    b_fused = jnp.concatenate(
        [params["bq"] * scale, params["bk"], params["bv"]])[None, :]       # (1, 2H+Dout)

    if batch_block is None:
        batch_block = B                       # toy shapes: whole batch in one grid step
    assert B % batch_block == 0
    grid = (B // batch_block,)

    kernel = functools.partial(_self_attention_kernel, H=H, Dout=Dout,
                               mxu_dtype=mxu_dtype)

    return pl.pallas_call(
        kernel,
        out_shape=jax.ShapeDtypeStruct((B, S, Dout), x.dtype),
        grid_spec=pltpu.PrefetchScalarGridSpec(
            num_scalar_prefetch=0,
            grid=grid,
            in_specs=[
                pl.BlockSpec((batch_block, S, Din), lambda i: (i, 0, 0)),   # x
                pl.BlockSpec(w_fused.shape, lambda i: (0, 0)),              # fused W
                pl.BlockSpec(b_fused.shape, lambda i: (0, 0)),              # fused b
            ],
            out_specs=pl.BlockSpec((batch_block, S, Dout), lambda i: (i, 0, 0)),
        ),
        compiler_params=pltpu.CompilerParams(
            # "parallel" lets the v7x megacore partitioner shard batch blocks
            # across TensorCores when B // batch_block > 1.
            dimension_semantics=("parallel",)),
    )(x, w_fused, b_fused)


def init_params(key, input_dim, hidden_dim, output_dim):
    """Deterministic init mimicking nn.Linear (uniform ±1/sqrt(fan_in)).
    Weights are stored pre-transposed: [in_dim, out_dim]."""
    ks = jax.random.split(key, 6)
    bound = 1.0 / math.sqrt(input_dim)
    u = lambda k, shape: jax.random.uniform(k, shape, jnp.float32, -bound, bound)
    return {
        "wq": u(ks[0], (input_dim, hidden_dim)),
        "bq": u(ks[1], (hidden_dim,)),
        "wk": u(ks[2], (input_dim, hidden_dim)),
        "bk": u(ks[3], (hidden_dim,)),
        "wv": u(ks[4], (input_dim, output_dim)),
        "bv": u(ks[5], (output_dim,)),
    }


def self_attention_ref(x, params, hidden_dim):
    """Pure-JAX reference (eval-mode dropout = identity)."""
    q = x @ params["wq"] + params["bq"]
    k = x @ params["wk"] + params["bk"]
    v = x @ params["wv"] + params["bv"]
    s = jnp.einsum("bqh,bkh->bqk", q, k) / math.sqrt(hidden_dim)
    p = jax.nn.softmax(s, axis=-1)
    return jnp.einsum("bqk,bkd->bqd", p, v)


if __name__ == "__main__":
    # Small shapes consistent with the module: SelfAttention(input_dim, hidden, output, dropout)
    B, S = 2, 8
    input_dim, hidden_dim, output_dim = 16, 32, 32

    key = jax.random.PRNGKey(0)
    kx, kp = jax.random.split(key)
    x = jax.random.normal(kx, (B, S, input_dim), dtype=jnp.float32)
    seq_lens = jnp.array([8, 5], dtype=jnp.int32)  # unused for is_flat=False path

    params = init_params(kp, input_dim, hidden_dim, output_dim)

    out = self_attention_pallas(x, params, hidden_dim)
    out = jax.block_until_ready(out)

    ref = self_attention_ref(x, params, hidden_dim)
    assert out.shape == (B, S, output_dim)
    # Tolerance loosened slightly for pl.reciprocal(approx=True) in the softmax normalizer.
    assert jnp.allclose(out, ref, atol=5e-3, rtol=5e-3), "mismatch vs reference"

    print("KERNEL_OK")
</pallas_src>

<mosaic_0001>
module attributes {stable_mosaic.version = 11 : i64} {
  func.func @_self_attention_kernel(%arg0: i32, %arg1: memref<2x8x16xf32, #tpu.memory_space<vmem>>, %arg2: memref<16x96xf32, #tpu.memory_space<vmem>>, %arg3: memref<1x96xf32, #tpu.memory_space<vmem>>, %arg4: memref<2x8x32xf32, #tpu.memory_space<vmem>>) attributes {dimension_semantics = [#tpu.dimension_semantics<parallel>], iteration_bounds = array<i64: 1>, scalar_prefetch = 0 : i64, scratch_operands = 0 : i64, tpu.core_type = #tpu.core_type<tc>, window_params = [{transform_indices = @transform_0, window_bounds = array<i64: 2, 8, 16>}, {pipeline_mode = #tpu.pipeline_mode<synchronous>, transform_indices = @transform_1, window_bounds = array<i64: 16, 96>}, {pipeline_mode = #tpu.pipeline_mode<synchronous>, transform_indices = @transform_2, window_bounds = array<i64: 1, 96>}, {transform_indices = @transform_3, window_bounds = array<i64: 2, 8, 32>}]} {
    %c0 = arith.constant 0 : index
    %c0_0 = arith.constant 0 : index
    %c0_1 = arith.constant 0 : index
    %0 = vector.load %arg1[%c0, %c0_0, %c0_1] : memref<2x8x16xf32, #tpu.memory_space<vmem>>, vector<2x8x16xf32>
    %1 = vector.shape_cast %0 : vector<2x8x16xf32> to vector<16x16xf32>
    %c0_2 = arith.constant 0 : index
    %c0_3 = arith.constant 0 : index
    %2 = vector.load %arg2[%c0_2, %c0_3] : memref<16x96xf32, #tpu.memory_space<vmem>>, vector<16x96xf32>
    %cst = arith.constant dense<0.000000e+00> : vector<16x96xf32>
    %3 = tpu.matmul %1, %2, %cst {dimension_numbers = #tpu.dot_dimension_numbers<[1], [0], [0], [1], [0, 0, 1, 1], [], []>} : vector<16x16xf32>, vector<16x96xf32>, vector<16x96xf32> -> vector<16x96xf32>
    %c0_4 = arith.constant 0 : index
    %c0_5 = arith.constant 0 : index
    %4 = vector.load %arg3[%c0_4, %c0_5] : memref<1x96xf32, #tpu.memory_space<vmem>>, vector<1x96xf32>
    %5 = vector.broadcast %4 : vector<1x96xf32> to vector<16x96xf32>
    %6 = arith.addf %3, %5 : vector<16x96xf32>
    %7 = vector.shape_cast %6 : vector<16x96xf32> to vector<2x8x96xf32>
    %8 = vector.extract_strided_slice %7 {offsets = [0, 0, 0], sizes = [2, 8, 32], strides = [1, 1, 1]} : vector<2x8x96xf32> to vector<2x8x32xf32>
    %9 = vector.extract_strided_slice %7 {offsets = [0, 0, 32], sizes = [2, 8, 32], strides = [1, 1, 1]} : vector<2x8x96xf32> to vector<2x8x32xf32>
    %10 = vector.extract_strided_slice %7 {offsets = [0, 0, 64], sizes = [2, 8, 32], strides = [1, 1, 1]} : vector<2x8x96xf32> to vector<2x8x32xf32>
    "tpu.trace_start"() <{level = 10 : i32, message = "bqh,bkh->bqk"}> : () -> ()
    %cst_6 = arith.constant dense<0.000000e+00> : vector<2x8x8xf32>
    %11 = tpu.matmul %8, %9, %cst_6 {dimension_numbers = #tpu.dot_dimension_numbers<[2], [2], [1], [1], [0, 0, 0, 1, 1, 1], [0], [0]>} : vector<2x8x32xf32>, vector<2x8x32xf32>, vector<2x8x8xf32> -> vector<2x8x8xf32>
    "tpu.trace_stop"() : () -> ()
    %cst_7 = arith.constant dense<0xFF800000> : vector<2x8xf32>
    %12 = vector.multi_reduction <maximumf>, %11, %cst_7 [2] : vector<2x8x8xf32> to vector<2x8xf32>
    %13 = vector.shape_cast %12 : vector<2x8xf32> to vector<2x8x1xf32>
    %14 = vector.broadcast %13 : vector<2x8x1xf32> to vector<2x8x8xf32>
    %15 = arith.subf %11, %14 : vector<2x8x8xf32>
    %16 = math.exp %15 : vector<2x8x8xf32>
    %cst_8 = arith.constant dense<0.000000e+00> : vector<2x8xf32>
    %17 = vector.multi_reduction <add>, %16, %cst_8 [2] : vector<2x8x8xf32> to vector<2x8xf32>
    %18 = vector.shape_cast %17 : vector<2x8xf32> to vector<2x8x1xf32>
    %19 = tpu.reciprocal %18 {approx = true} : vector<2x8x1xf32> -> vector<2x8x1xf32>
    %20 = vector.broadcast %19 : vector<2x8x1xf32> to vector<2x8x8xf32>
    %21 = arith.mulf %16, %20 : vector<2x8x8xf32>
    "tpu.trace_start"() <{level = 10 : i32, message = "bqk,bkd->bqd"}> : () -> ()
    %cst_9 = arith.constant dense<0.000000e+00> : vector<2x8x32xf32>
    %22 = tpu.matmul %21, %10, %cst_9 {dimension_numbers = #tpu.dot_dimension_numbers<[2], [1], [1], [2], [0, 0, 0, 1, 1, 2], [0], [0]>} : vector<2x8x8xf32>, vector<2x8x32xf32>, vector<2x8x32xf32> -> vector<2x8x32xf32>
    "tpu.trace_stop"() : () -> ()
    %c0_10 = arith.constant 0 : index
    %c0_11 = arith.constant 0 : index
    %c0_12 = arith.constant 0 : index
    %23 = vector.load %arg4[%c0_10, %c0_11, %c0_12] : memref<2x8x32xf32, #tpu.memory_space<vmem>>, vector<2x8x32xf32>
    tpu.vector_store %arg4[%c0_10, %c0_11, %c0_12], %22 {strides = array<i32>} : memref<2x8x32xf32, #tpu.memory_space<vmem>>, vector<2x8x32xf32>,
    return
  }
  func.func @transform_0(%arg0: i32) -> (i32, i32, i32) {
    %c0_i32 = arith.constant 0 : i32
    %c0_i32_0 = arith.constant 0 : i32
    %c0_i32_1 = arith.constant 0 : i32
    return %arg0, %c0_i32, %c0_i32_0 : i32, i32, i32
  }
  func.func @transform_1(%arg0: i32) -> (i32, i32) {
    %c0_i32 = arith.constant 0 : i32
    %c0_i32_0 = arith.constant 0 : i32
    %c0_i32_1 = arith.constant 0 : i32
    return %c0_i32, %c0_i32_0 : i32, i32
  }
  func.func @transform_2(%arg0: i32) -> (i32, i32) {
    %c0_i32 = arith.constant 0 : i32
    %c0_i32_0 = arith.constant 0 : i32
    %c0_i32_1 = arith.constant 0 : i32
    return %c0_i32, %c0_i32_0 : i32, i32
  }
  func.func @transform_3(%arg0: i32) -> (i32, i32, i32) {
    %c0_i32 = arith.constant 0 : i32
    %c0_i32_0 = arith.constant 0 : i32
    %c0_i32_1 = arith.constant 0 : i32
    return %arg0, %c0_i32, %c0_i32_0 : i32, i32, i32
  }
}

</mosaic_0001>

<bundles_post_ra>
// kernel: tpu_custom_call.1
= control target key start
LH: loop header
LB: loop body
LE: loop exit
PB: predicated region body
PF: predicated region fallthrough
CT: control target
= control target key end

     0   :  { %8 = vsyncpa [#allocation3], 0  ;;  %s683_s0 = inlined_call_operand.hbm [shape: f32[2,8,16], index: 0, kind: input, shape index: {}]   ;;  %s684_s1 = inlined_call_operand.hbm [shape: f32[16,96], index: 1, kind: input, shape index: {}]   ;;  %s685_s2 = inlined_call_operand.vmem [shape: f32[1,96], index: 2, kind: input, shape index: {}]   ;;  %s686_s3 = inlined_call_operand.hbm [shape: f32[2,8,32], index: 3, kind: output, shape index: {}]  }
   0x1   :  { %9 = vsyncpa [#allocation6], 0 }
   0x2   :  { %10 = vsyncpa [#allocation4], 0  ;;  %s617_s12 = smov [#allocation2]  }
   0x3   :  { %s16_s13 = sshll.u32 %s617_s12, 4  ;;  %s17_s13 = int_to_ptr.vmem [resolvable:$true] %s16_s13 }
   0x4   :  { %s559_s14 = scalar_lea.vmem %s17_s13, 256  ;;  %p564_p1 = scmp.lt.s32.totalorder %s17_s13, %s17_s13 }
   0x5   :  { %p560_p0 = scmp.ne.s32.totalorder %s17_s13, %s559_s14  ;;  %p565_p2 = scmp.lt.s32.totalorder %s559_s14, %s559_s14 }
   0x7   :  { %p566_p3 = por %p565_p2, %p564_p1 }
   0x9   :  { %p567_p4 = pnand %p566_p3, %p560_p0 }
   0xb   :  { %570 = shalt.err (!%p567_p4)
}
   0xc   :  { %s618_s15 = smov 128   ;;  %s619_s16 = smov 8  }
   0xd   :  { %22 = dma.hbm_to_vmem [thread:$0]  %s683_s0, 256, %s17_s13, [#allocation3], %s618_s15, %s618_s15, %s619_s16  }
   0xe   :  { %s620_s19 = smov [#allocation5]  }
   0xf   :  { %s28_s20 = sshll.u32 %s620_s19, 4  ;;  %s29_s20 = int_to_ptr.vmem [resolvable:$true] %s28_s20 }
  0x10   :  { %s579_s21 = scalar_lea.vmem %s29_s20, 256  ;;  %p584_p6 = scmp.lt.s32.totalorder %s29_s20, %s29_s20 }
  0x11   :  { %p580_p5 = scmp.ne.s32.totalorder %s29_s20, %s579_s21  ;;  %p585_p7 = scmp.lt.s32.totalorder %s579_s21, %s579_s21 }
  0x13   :  { %p586_p8 = por %p585_p7, %p584_p6 }
  0x15   :  { %p587_p9 = pnand %p586_p8, %p580_p5 }
  0x17   :  { %590 = shalt.err (!%p587_p9)
}
  0x18   :  { %34 = dma.hbm_to_vmem [thread:$0]  %s684_s1, 256, %s29_s20, [#allocation6], %s618_s15, %s618_s15, %s619_s16  }
  0x19   :  { %611 = dma.done.wait [#allocation3], 256  }
  0x1a   :  { %612 = vsyncadd [#allocation3], 4294967040 }
  0x1b   :  { %613 = dma.done.wait [#allocation6], 256  }
  0x1c   :  { %614 = vsyncadd [#allocation6], 4294967040  ;;  %vm54_vm0 = vcmask 130048   ;;  %v46_v0 = vld [vmem:[#allocation5 + $0x8] sm:$0xff]  ;;  %v45_v1 = vld [vmem:[#allocation5] sm:$0xff]  ;;  %v621_v4 = vmov 0.0  }
  0x1d   :  { %v43_v2 = vld [vmem:[#allocation2] sm:$0xff]  ;;  %507 = vmatprep.subr.mxu0 %v46_v0  ;;  %v44_v3 = vld [vmem:[#allocation2 + $0x8] sm:$0xff]  ;;  %514 = vmatprep.subr.mxu1 %v621_v4  ;;  %vm622_vm1 = vmmov 0   ;;  %s623_s24 = smov 96   ;;  %vm139_vm2 = vcmask 261120   ;;  %vm291_vm3 = vcmask 64512  }
  0x1e   :  { %511 = vmatprep.mubr.msk.f32.mxu0 %vm54_vm0, %v43_v2  ;;  %508 = vmatpush3.msra.mxu0 %v46_v0  ;;  %v486_v6 = vld [vmem:[%s685_s2] ss:$0 sm:$0xff]  ;;  %s624_s2 = smov 64   ;;  %s625_s25 = smov [#allocation7]  }
  0x1f   :  { %509 = vmatprep.subr.mxu0 %v45_v1  ;;  %516 = vmatprep.mubr.msk.f32.mxu1 %vm622_vm1, %v621_v4  ;;  %s473_s26 = sshll.u32 %s625_s25, 4  ;;  %s474_s26 = int_to_ptr.vmem [resolvable:$true] %s473_s26 }
  0x20   :  { %510 = vmatpush3.msra.mxu0 %v45_v1  ;;  %s591_s27 = scalar_lea.vmem %s474_s26, 256  ;;  %p596_p11 = scmp.lt.s32.totalorder %s474_s26, %s474_s26 }
  0x21   :  { %512 = vmatmul.mubr.msk.f32.vlgmr.msra.gmra.mxu0 %vm54_vm0, %v44_v3  ;;  %519 = vmatprep.subr.mxu0 %v621_v4  ;;  %p592_p10 = scmp.ne.s32.totalorder %s474_s26, %s591_s27  ;;  %p597_p12 = scmp.lt.s32.totalorder %s591_s27, %s591_s27 }
  0x22   :  { %521 = vmatprep.mubr.msk.f32.mxu0 %vm622_vm1, %v621_v4 }
  0x23   :  { %p598_p13 = por %p597_p12, %p596_p11 }
  0x25   :  { %p599_p0 = pnand %p598_p13, %p592_p10 }
  0xe1   :  { %v513_v5 = vpop.f32.mrf.mxu0 }
  0xe2   :  { %v133_v9 = vadd.f32 %v513_v5, %v486_v6 }
  0xe3   :  { %v127_v7 = vpop.f32.mrf.mxu0 }
  0xe4   :  { %v128_v8 = vadd.f32 %v486_v6, %v127_v7 }
  0xe6   :  { %137 = vrot.lane.b32.xlu0 %v128_v8, %s623_s24 }
  0xea   :  { %215 = vrot.lane.b32.xlu0 %v133_v9, %s623_s24 }
 0x158   :  { %v138_v10 = vpop.permute.xlu0 %137 }
 0x159   :  { %515 = vmatpush3.xpose.msk.msra.mxu1 %vm139_vm2, %v138_v10 }
 0x15a   :  { %524 = vmatprep.subr.mxu1 %v621_v4 }
 0x15c   :  { %517 = vmatmul.mubr.msk.f32.vlgmr.msra.gmra.mxu1 %vm139_vm2, %v128_v8  ;;  %v216_v11 = vpop.permute.xlu0 %215 }
 0x15d   :  { %520 = vmatpush3.xpose.msk.msra.mxu0 %vm139_vm2, %v216_v11  ;;  %526 = vmatprep.mubr.msk.f32.mxu1 %vm622_vm1, %v621_v4 }
 0x15e   :  { %529 = vmatprep.subr.mxu0 %v621_v4 }
 0x160   :  { %522 = vmatmul.mubr.msk.f32.vlgmr.msra.gmra.mxu0 %vm139_vm2, %v133_v9 }
 0x161   :  { %531 = vmatprep.mubr.msk.f32.mxu0 %vm622_vm1, %v621_v4 }
 0x21c   :  { %v210_v12 = vpop.f32.mrf.mxu1 }
 0x21d   :  { %v292_v13 = vsel %vm291_vm3, %v210_v12, -inf }
 0x21e   :  { %293 = vmax.xlane.f32.xlu1 %v292_v13  ;;  %v518_v14 = vpop.f32.mrf.mxu1 }
 0x220   :  { %v287_v15 = vpop.f32.mrf.mxu0 }
 0x221   :  { %v295_v16 = vsel %vm291_vm3, %v287_v15, -inf }
 0x222   :  { %296 = vmax.xlane.f32.xlu1 %v295_v16  ;;  %v523_v17 = vpop.f32.mrf.mxu0 }
 0x2a7   :  { %v294_v18 = vpop.xlane.xlu1 %293 }
 0x2a8   :  { %v298_v19 = vsub.f32 %v210_v12, %v294_v18 }
 0x2aa   :  { %v300_v20 = vmul.f32 1.442695, %v298_v19 }
 0x2ab   :  { %v297_v21 = vpop.xlane.xlu1 %296 }
 0x2ac   :  { %543 = vpow2.f32 %v300_v20  ;;  %v299_v22 = vsub.f32 %v287_v15, %v297_v21 }
 0x2ae   :  { %v302_v23 = vmul.f32 1.442695, %v299_v22 }
 0x2b0   :  { %545 = vpow2.f32 %v302_v23 }
 0x2b9   :  { %v544_v24 = vpop.eup %543 }
 0x2ba   :  { %v304_v25 = vsel %vm291_vm3, %v544_v24, 0.0 }
 0x2bb   :  { %305 = vadd.xlane.f32.xlu0 %v304_v25 }
 0x2bd   :  { %v546_v26 = vpop.eup %545 }
 0x2be   :  { %v307_v27 = vsel %vm291_vm3, %v546_v26, 0.0 }
 0x2bf   :  { %308 = vadd.xlane.f32.xlu1 %v307_v27 }
 0x2d0   :  { %314 = vrot.lane.b32.xlu1 %v128_v8, %s624_s2 }
 0x2d4   :  { %390 = vrot.lane.b32.xlu1 %v133_v9, %s624_s2 }
 0x344   :  { %v306_v28 = vpop.xlane.xlu0 %305 }
 0x345   :  { %547 = vrcp.f32 %v306_v28 }
 0x348   :  { %v309_v29 = vpop.xlane.xlu1 %308 }
 0x349   :  { %549 = vrcp.f32 %v309_v29 }
 0x34c   :  { %v315_v30 = vpop.permute.xlu1 %314 }
 0x34d   :  { %525 = vmatpush3.msra.mxu1 %v315_v30 }
 0x350   :  { %v391_v31 = vpop.permute.xlu1 %390 }
 0x351   :  { %530 = vmatpush3.msra.mxu0 %v391_v31 }
 0x352   :  { %v548_v32 = vpop.eup %547 }
 0x353   :  { %v312_v33 = vmul.f32 %v548_v32, %v544_v24 }
 0x355   :  { %527 = vmatmul.mubr.msk.f32.vlgmr.msra.gmra.mxu1 %vm291_vm3, %v312_v33 }
 0x356   :  { %v550_v34 = vpop.eup %549 }
 0x357   :  { %v313_v35 = vmul.f32 %v550_v34, %v546_v26 }
 0x359   :  { %532 = vmatmul.mubr.msk.f32.vlgmr.msra.gmra.mxu0 %vm291_vm3, %v313_v35 }
 0x415   :  { %v386_v36 = vpop.f32.mrf.mxu1 }
 0x416   :  { %466 = vst.msk [vmem:[#allocation7] sm:$0xff] %vm139_vm2, %v386_v36 }
 0x417   :  { %v528_v37 = vpop.f32.mrf.mxu1 }
 0x419   :  { %v462_v38 = vpop.f32.mrf.mxu0 }
 0x41a   :  { %467 = vst.msk [vmem:[#allocation7 + $0x8] sm:$0xff] %vm139_vm2, %v462_v38 }
 0x41b   :  { %v533_v39 = vpop.f32.mrf.mxu0 }
 0x41c   :  { %602 = shalt.err (!%p599_p0)
}
 0x41d   :  { %479 = dma.vmem_to_hbm [thread:$0]  %s474_s26, 256, %s686_s3, [#allocation4], %s618_s15, %s618_s15, %s619_s16  }
 0x41e   :  { %615 = dma.done.wait [#allocation4], 256  }
 0x41f   :  { %616 = vsyncadd [#allocation4], 4294967040 }
 0x420   :  { %483 = vsyncpa [#allocation3], 1 }
 0x421   :  { %484 = vsyncpa [#allocation6], 1 }
 0x422   :  { %485 = vsyncpa [#allocation4], 1 }

</bundles_post_ra>
